<compile_context>
chip_gen: v6e
topology: v6e:2x2x1
jax: 0.10.0
libtpu: 0.0.40
codegen_flags: <defaults>
</compile_context>

<pallas_src>
import jax
import jax.numpy as jnp
from jax.experimental import pallas as pl
from jax.experimental.pallas import tpu as pltpu

BASIC_ANSWER = "Je n'ai pas compris, merci de reformuler la question"


def _noise_filter_wrapper_kernel(x_ref, wfd_ref, bd_ref, wc_ref, bc_ref,
                                 out_ref, flag_ref):
    Bt, S, H = x_ref.shape
    x = x_ref[...]                                           # (Bt, S, H) f32

    # ---- noise filter, vectorized over the whole block (VPU/XLU, no MXU) --
    # wfd folds the 1/S mean-pool scale and the class1-class0 weight diff;
    # bd = bf[0,1] - bf[0,0].  score_b == logits_b[1] - logits_b[0].
    weighted = x * wfd_ref[...]                              # (Bt, S, H)
    scores = jnp.sum(weighted, axis=2)                       # (Bt, S)
    scores = jnp.sum(scores, axis=1, keepdims=True)          # (Bt, 1)
    is_clean = (scores + bd_ref[0]) > 0.0   # strict >: ties -> class 0 (argmax)

    # one vector store for the whole block of flags
    flag_ref[...] = is_clean.astype(jnp.int32)               # (Bt, 1) i32

    # ---- chatbot: one fused matmul over all Bt*S rows, masked per sentence -
    x2d = x.reshape(Bt * S, H)
    chat = jnp.tanh(
        jnp.dot(x2d, wc_ref[...], preferred_element_type=jnp.float32)
        + bc_ref[...])                                       # (Bt*S, H)
    chat = chat.reshape(Bt, S, H)
    # zeros stand in for the "basic answer" branch (string lives on host)
    out_ref[...] = jnp.where(is_clean[:, :, None], chat,
                             0.0).astype(out_ref.dtype)


def noise_filter_wrapper(x, wf, bf, wc, bc, *, block_b=None):
    """x: (B, S, H) f32. Returns (response (B, S, H) f32, flags (B, 1) i32)."""
    B, S, H = x.shape
    if block_b is None:
        # keep >= 2 grid blocks along the batch axis when possible (v7x has
        # 2 TensorCores; "parallel" is a no-op on v5e/v6e so this is free).
        block_b = B // 2 if (B >= 2 and B % 2 == 0) else B
    assert B % block_b == 0, "batch must be divisible by block_b"
    Bt = block_b
    num_blocks = B // Bt

    wf = wf.astype(jnp.float32)
    bf = bf.astype(jnp.float32)
    # Fold mean-pool (1/S) + two-class argmax into one direction + scalar bias.
    wf_diff = ((wf[:, 1] - wf[:, 0]) * (1.0 / S)).reshape(1, H)
    b_diff = (bf[0, 1] - bf[0, 0]).reshape(1)

    out_shapes = (
        jax.ShapeDtypeStruct((B, S, H), jnp.float32),
        jax.ShapeDtypeStruct((B, 1), jnp.int32),
    )
    return pl.pallas_call(
        _noise_filter_wrapper_kernel,
        out_shape=out_shapes,
        grid=(num_blocks,),
        in_specs=[
            pl.BlockSpec((Bt, S, H), lambda b: (b, 0, 0)),         # x (Bt sentences)
            pl.BlockSpec((1, H), lambda b: (0, 0)),                # wf_diff (resident)
            pl.BlockSpec(memory_space=pltpu.MemorySpace.SMEM),     # b_diff scalar
            pl.BlockSpec((H, H), lambda b: (0, 0)),                # wc (resident)
            pl.BlockSpec((1, H), lambda b: (0, 0)),                # bc (resident)
        ],
        out_specs=(
            pl.BlockSpec((Bt, S, H), lambda b: (b, 0, 0)),
            pl.BlockSpec((Bt, 1), lambda b: (b, 0)),               # flags (VMEM)
        ),
        compiler_params=pltpu.CompilerParams(
            dimension_semantics=("parallel",)),
    )(x, wf_diff, b_diff, wc, bc)


def forward_batch(sentences, params):
    """Host wrapper reproducing the PyTorch per-sentence return convention,
    with a single device round-trip for the whole batch."""
    wf, bf, wc, bc = params
    responses, flags = noise_filter_wrapper(sentences, wf, bf, wc, bc)
    responses, flags = jax.block_until_ready((responses, flags))
    flags_host = jax.device_get(flags)[:, 0]
    results = []
    for i, f in enumerate(flags_host):
        if int(f) == 1:
            results.append((responses[i], None, None))   # chatbot(sentence)-like
        else:
            results.append((BASIC_ANSWER, None, None))
    return results


if __name__ == "__main__":
    # 32 sentences, seq 8, hidden 128 -> Bt=16 per block, grid=(2,),
    # 128 rows per fused matmul, 64 KiB per x/out block DMA.
    B, S, H = 32, 8, 128

    key = jax.random.PRNGKey(0)
    kx, kwf, kbf, kwc, kbc = jax.random.split(key, 5)

    x = jax.random.normal(kx, (B, S, H), dtype=jnp.float32)
    wf = jax.random.normal(kwf, (H, 2), dtype=jnp.float32) * 0.05
    bf = jax.random.normal(kbf, (1, 2), dtype=jnp.float32) * 0.05
    wc = jax.random.normal(kwc, (H, H), dtype=jnp.float32) * 0.05
    bc = jax.random.normal(kbc, (1, H), dtype=jnp.float32) * 0.05

    # Push sentence 0 towards "clean" and sentence 1 towards "noise" so both
    # masked branches are exercised deterministically.
    d = wf[:, 1] - wf[:, 0]
    d = d / jnp.linalg.norm(d)
    x = x.at[0].add(5.0 * d)
    x = x.at[1].add(-5.0 * d)

    # run kernel once and block on the result
    response, flag = noise_filter_wrapper(x, wf, bf, wc, bc)
    response, flag = jax.block_until_ready((response, flag))

    # pure-JAX reference check
    pooled = jnp.mean(x, axis=1, keepdims=True)                   # (B, 1, H)
    logits = jnp.einsum("bsh,hc->bsc", pooled, wf) + bf           # (B, 1, 2)
    score_ref = logits[:, 0, 1] - logits[:, 0, 0]                 # (B,)
    is_clean_ref = (score_ref > 0.0).astype(jnp.int32)            # (B,)
    chat_ref = jnp.tanh(jnp.einsum("bsh,hk->bsk", x, wc) + bc)    # (B, S, H)

    # Flag check: folded-sum vs mean-pool rounding can only differ at the
    # decision boundary; ignore (non-existent here) near-zero scores.
    non_boundary = jnp.abs(score_ref) > 1e-5
    assert bool(jnp.all(jnp.where(non_boundary,
                                  flag[:, 0] == is_clean_ref, True)))
    # Response check uses the kernel's own flags for masking.
    out_expected = jnp.where(flag[:, 0].astype(bool)[:, None, None],
                             chat_ref, jnp.zeros_like(chat_ref))
    assert jnp.allclose(response, out_expected, atol=1e-5, rtol=1e-5)
    # both branches must have been taken
    assert int(flag[0, 0]) == 1 and int(flag[1, 0]) == 0

    # exercise the host-level branch as in the PyTorch module
    _ = forward_batch(x, (wf, bf, wc, bc))

    print("KERNEL_OK")
</pallas_src>

<mosaic_0001>
module attributes {stable_mosaic.version = 11 : i64} {
  func.func @_noise_filter_wrapper_kernel(%arg0: i32, %arg1: memref<16x8x128xf32, #tpu.memory_space<vmem>>, %arg2: memref<1x128xf32, #tpu.memory_space<vmem>>, %arg3: memref<1xf32, #tpu.memory_space<smem>>, %arg4: memref<128x128xf32, #tpu.memory_space<vmem>>, %arg5: memref<1x128xf32, #tpu.memory_space<vmem>>, %arg6: memref<16x8x128xf32, #tpu.memory_space<vmem>>, %arg7: memref<16x1xi32, #tpu.memory_space<vmem>>) attributes {dimension_semantics = [#tpu.dimension_semantics<parallel>], iteration_bounds = array<i64: 2>, scalar_prefetch = 0 : i64, scratch_operands = 0 : i64, tpu.core_type = #tpu.core_type<tc>, window_params = [{transform_indices = @transform_0, window_bounds = array<i64: 16, 8, 128>}, {pipeline_mode = #tpu.pipeline_mode<synchronous>, transform_indices = @transform_1, window_bounds = array<i64: 1, 128>}, {transform_indices = @transform_2, window_bounds = array<i64: 1>}, {pipeline_mode = #tpu.pipeline_mode<synchronous>, transform_indices = @transform_3, window_bounds = array<i64: 128, 128>}, {pipeline_mode = #tpu.pipeline_mode<synchronous>, transform_indices = @transform_4, window_bounds = array<i64: 1, 128>}, {transform_indices = @transform_5, window_bounds = array<i64: 16, 8, 128>}, {transform_indices = @transform_6, window_bounds = array<i64: 16, 1>}]} {
    %c0 = arith.constant 0 : index
    %c0_0 = arith.constant 0 : index
    %c0_1 = arith.constant 0 : index
    %0 = vector.load %arg1[%c0, %c0_0, %c0_1] : memref<16x8x128xf32, #tpu.memory_space<vmem>>, vector<16x8x128xf32>
    %c0_2 = arith.constant 0 : index
    %c0_3 = arith.constant 0 : index
    %1 = vector.load %arg2[%c0_2, %c0_3] : memref<1x128xf32, #tpu.memory_space<vmem>>, vector<1x128xf32>
    %2 = vector.shape_cast %1 : vector<1x128xf32> to vector<1x1x128xf32>
    %3 = vector.broadcast %2 : vector<1x1x128xf32> to vector<16x8x128xf32>
    %4 = arith.mulf %0, %3 : vector<16x8x128xf32>
    %cst = arith.constant dense<0.000000e+00> : vector<16x8xf32>
    %5 = vector.multi_reduction <add>, %4, %cst [2] : vector<16x8x128xf32> to vector<16x8xf32>
    %cst_4 = arith.constant dense<0.000000e+00> : vector<16xf32>
    %6 = vector.multi_reduction <add>, %5, %cst_4 [1] : vector<16x8xf32> to vector<16xf32>
    %7 = vector.shape_cast %6 : vector<16xf32> to vector<16x1xf32>
    %c0_5 = arith.constant 0 : index
    %8 = memref.load %arg3[%c0_5] : memref<1xf32, #tpu.memory_space<smem>>
    %9 = vector.broadcast %8 : f32 to vector<16x1xf32>
    %10 = arith.addf %7, %9 : vector<16x1xf32>
    %cst_6 = arith.constant 0.000000e+00 : f32
    %11 = vector.broadcast %cst_6 : f32 to vector<16x1xf32>
    %12 = arith.cmpf ogt, %10, %11 : vector<16x1xf32>
    %13 = arith.extui %12 : vector<16x1xi1> to vector<16x1xi32>
    %c0_7 = arith.constant 0 : index
    %c0_8 = arith.constant 0 : index
    %14 = vector.load %arg7[%c0_7, %c0_8] : memref<16x1xi32, #tpu.memory_space<vmem>>, vector<16x1xi32>
    tpu.vector_store %arg7[%c0_7, %c0_8], %13 {strides = array<i32>} : memref<16x1xi32, #tpu.memory_space<vmem>>, vector<16x1xi32>,
    %15 = vector.shape_cast %0 : vector<16x8x128xf32> to vector<128x128xf32>
    %c0_9 = arith.constant 0 : index
    %c0_10 = arith.constant 0 : index
    %16 = vector.load %arg4[%c0_9, %c0_10] : memref<128x128xf32, #tpu.memory_space<vmem>>, vector<128x128xf32>
    %cst_11 = arith.constant dense<0.000000e+00> : vector<128x128xf32>
    %17 = tpu.matmul %15, %16, %cst_11 {dimension_numbers = #tpu.dot_dimension_numbers<[1], [0], [0], [1], [0, 0, 1, 1], [], []>} : vector<128x128xf32>, vector<128x128xf32>, vector<128x128xf32> -> vector<128x128xf32>
    %c0_12 = arith.constant 0 : index
    %c0_13 = arith.constant 0 : index
    %18 = vector.load %arg5[%c0_12, %c0_13] : memref<1x128xf32, #tpu.memory_space<vmem>>, vector<1x128xf32>
    %19 = vector.broadcast %18 : vector<1x128xf32> to vector<128x128xf32>
    %20 = arith.addf %17, %19 : vector<128x128xf32>
    %21 = math.tanh %20 : vector<128x128xf32>
    %22 = vector.shape_cast %21 : vector<128x128xf32> to vector<16x8x128xf32>
    %23 = vector.shape_cast %12 : vector<16x1xi1> to vector<16x1x1xi1>
    %cst_14 = arith.constant 0.000000e+00 : f32
    %24 = vector.shape_cast %23 : vector<16x1x1xi1> to vector<16x1x1xi1>
    %25 = vector.broadcast %24 : vector<16x1x1xi1> to vector<16x8x128xi1>
    %26 = vector.broadcast %cst_14 : f32 to vector<16x8x128xf32>
    %27 = arith.select %25, %22, %26 : vector<16x8x128xi1>, vector<16x8x128xf32>
    %c0_15 = arith.constant 0 : index
    %c0_16 = arith.constant 0 : index
    %c0_17 = arith.constant 0 : index
    %28 = vector.load %arg6[%c0_15, %c0_16, %c0_17] : memref<16x8x128xf32, #tpu.memory_space<vmem>>, vector<16x8x128xf32>
    tpu.vector_store %arg6[%c0_15, %c0_16, %c0_17], %27 {strides = array<i32>} : memref<16x8x128xf32, #tpu.memory_space<vmem>>, vector<16x8x128xf32>,
    return
  }
  func.func @transform_0(%arg0: i32) -> (i32, i32, i32) {
    %c0_i32 = arith.constant 0 : i32
    %c0_i32_0 = arith.constant 0 : i32
    %c0_i32_1 = arith.constant 0 : i32
    return %arg0, %c0_i32, %c0_i32_0 : i32, i32, i32
  }
  func.func @transform_1(%arg0: i32) -> (i32, i32) {
    %c0_i32 = arith.constant 0 : i32
    %c0_i32_0 = arith.constant 0 : i32
    %c0_i32_1 = arith.constant 0 : i32
    return %c0_i32, %c0_i32_0 : i32, i32
  }
  func.func @transform_2(%arg0: i32) -> i32 {
    %c0_i32 = arith.constant 0 : i32
    %c0_i32_0 = arith.constant 0 : i32
    return %c0_i32 : i32
  }
  func.func @transform_3(%arg0: i32) -> (i32, i32) {
    %c0_i32 = arith.constant 0 : i32
    %c0_i32_0 = arith.constant 0 : i32
    %c0_i32_1 = arith.constant 0 : i32
    return %c0_i32, %c0_i32_0 : i32, i32
  }
  func.func @transform_4(%arg0: i32) -> (i32, i32) {
    %c0_i32 = arith.constant 0 : i32
    %c0_i32_0 = arith.constant 0 : i32
    %c0_i32_1 = arith.constant 0 : i32
    return %c0_i32, %c0_i32_0 : i32, i32
  }
  func.func @transform_5(%arg0: i32) -> (i32, i32, i32) {
    %c0_i32 = arith.constant 0 : i32
    %c0_i32_0 = arith.constant 0 : i32
    %c0_i32_1 = arith.constant 0 : i32
    return %arg0, %c0_i32, %c0_i32_0 : i32, i32, i32
  }
  func.func @transform_6(%arg0: i32) -> (i32, i32) {
    %c0_i32 = arith.constant 0 : i32
    %c0_i32_0 = arith.constant 0 : i32
    return %arg0, %c0_i32 : i32, i32
  }
}

</mosaic_0001>

<bundles_post_ra>
// kernel: tpu_custom_call.1
= control target key start
LH: loop header
LB: loop body
LE: loop exit
PB: predicated region body
PF: predicated region fallthrough
CT: control target
= control target key end

     0   :  { %s1728_s0 = inlined_call_operand.hbm [shape: f32[32,8,128], index: 0, kind: input, shape index: {}]   ;;  %s1729_s1 = inlined_call_operand.vmem [shape: f32[1,128], index: 1, kind: input, shape index: {}]   ;;  %s1730_s2 = inlined_call_operand.<no memory space> [shape: f32[1], index: 2, kind: input, shape index: {}]   ;;  %s1731_s3 = inlined_call_operand.hbm [shape: f32[128,128], index: 3, kind: input, shape index: {}]   ;;  %s1732_s4 = inlined_call_operand.vmem [shape: f32[1,128], index: 4, kind: input, shape index: {}]   ;;  %s1733_s5 = inlined_call_operand.hbm [shape: f32[32,8,128], index: 5, kind: output, shape index: {0}]   ;;  %s1734_s6 = inlined_call_operand.vmem [shape: s32[32,1], index: 6, kind: output, shape index: {1}]  }
   0x1   :  { %12 = sst [smem:[#allocation2]] %s1730_s2 }
   0x2   :  { %13 = vsyncpa [#allocation4], 0 }
   0x3   :  { %15 = vsyncpa [#allocation4 + $0x1], 0 }
   0x4   :  { %16 = vsyncpa [#allocation7], 0 }
   0x5   :  { %17 = vsyncpa [#allocation5], 0 }
   0x6   :  { %19 = vsyncpa [#allocation5 + $0x1], 0  ;;  %s1361_s23 = smov 0   ;;  %s1363_s24 = smov 0  }
   0x7   :  { %s1365_s25 = smov 0   ;;  %s1367_s26 = smov 0  }
   0x8 LB: > { %s1382_s2 = sadd.s32 4294967295, %s1313_s26   ;;  %s955_s27 = sadd.s32 4294967294, %s1313_s26   ;;  %s1313_s26 = sphi %s1367_s26, %s1758_s26   ;;  %s1309_s25 = sphi %s1365_s25, %s1757_s25   ;;  %s1305_s24 = sphi %s1363_s24, %s1756_s24   ;;  %s1301_s23 = sphi %s1361_s23, %s1755_s23  }
   0x9   : > { %p45_p0 = scmp.ne.s32.totalorder %s1305_s24, %s1301_s23  ;;  %p1735_p1 = scmp.eq.s32.totalorder %s1382_s2, 0 }
   0xa   : > { %p159_p3 = scmp.eq.s32.totalorder %s955_s27, 1  ;;  %p956_p5 = scmp.ge.s32.totalorder %s1313_s26, 1 }
   0xb   : > { %p1391_p4 = por %p1735_p1, %p45_p0  ;;  %p192_p7 = scmp.lt.s32.totalorder %s1313_s26, 3 }
   0xc   : > { %p1396_p6 = por %p159_p3, %p45_p0  ;;  %s1315_s7 = smov [#allocation6]  }
   0xd   : > { %s1740_s28 = scalar_select %p1391_p4, 1, 0 }
   0xe   : > { %s1741_s29 = scalar_select %p1396_p6, 1, 0 }
   0xf   : > { %p1401_p8 = pnand %p956_p5, %p192_p7  ;;  %s210_s8 = sshll.u32 %s1315_s7, 4  ;;  %s211_s8 = int_to_ptr.vmem [resolvable:$true] %s210_s8 }
  0x10   : > { %s1415_s10 = sadd.s32 1, %s1313_s26   ;;  %s32_s11 = sadd.s32 1, %s1309_s25 }
  0x11   : > { %s1742_s30 = scalar_select %p1401_p8, 1, 0 }
  0x12   : > { %p1105_p9 = pneg %p1401_p8  ;;  %s29_s12 = ssub.s32 %s1313_s26, %s1415_s10 }
  0x13   : > { %s1202_s13 = scalar_lea.vmem %s211_s8, 2048  ;;  %p1210_p5 = scmp.lt.s32.totalorder %s211_s8, %s211_s8 }
  0x14   : > { %p1410_p11 = pnand %p1105_p9, %p1735_p1  ;;  %p1203_p13 = scmp.ne.s32.totalorder %s211_s8, %s1202_s13 }
  0x15   : > { %p1211_p7 = scmp.lt.s32.totalorder %s1202_s13, %s1202_s13 }
  0x16   : > { %p1193_p12 = pneg %p1410_p11 }
  0x17   : > { %p1212_p10 = por %p1211_p7, %p1210_p5 }
  0x18   : > { %p1205_p0 = pnand %p1203_p13, %p1193_p12 }
  0x1a   : > { %p1206_p3 = pneg %p1205_p0 }
  0x1c   : > { %p1213_p2 = pnand %p1212_p10, %p1206_p3 }
  0x1e   : > { %1216 = shalt.err (!%p1213_p2)
}
  0x1f   : > { %s1736_s14 = smov 128   ;;  %s1317_s15 = smov 8  }
  0x20   : > { %1108 = dma.hbm_to_vmem [thread:$0]  (!%p1410_p11), %s1731_s3, 2048, %s211_s8, [#allocation7], %s1736_s14, %s1736_s14, %s1317_s15  }
  0x21   : > { %p30_p2 = scmp.eq.s32.totalorder %s29_s12, 0  ;;  %p39_p9 = scmp.ne.s32.totalorder %s1309_s25, %s1305_s24 }
  0x22   : > { %p40_p10 = scmp.eq.s32.totalorder %s1313_s26, 0  ;;  %p1118_p12 = scmp.lt.s32.totalorder %s1313_s26, 2 }
  0x23   : > { %s1435_s18 = scalar_select %p30_p2, %s1309_s25, %s32_s11  }
  0x24   : > { %p41_p13 = por %p40_p10, %p39_p9  ;;  %p1744_p0 = scmp.eq.s32.totalorder %s1382_s2, 1 }
  0x25   : > { %s227_s20 = sand.u32 1, %s1309_s25   ;;  %s975_s21 = sshll.u32 %s1313_s26, 11 }
  0x26   : > { %p1439_p3 = por %p1744_p0, %p39_p9  ;;  %s959_s22 = sshll.u32 %s227_s20, 7 }
  0x27   : > { %s1448_s9 = scalar_lea.hbm %s1728_s0, %s975_s21  ;;  %s231_s8 = scalar_lea.vmem [#allocation3], %s959_s22 }
  0x28   : > { %s1745_s19 = scalar_select %p1439_p3, 1, 0 }
  0x29   : > { %s238_s11 = sshll.u32 %s231_s8, 4  ;;  %p1450_p11 = pnand %p1118_p12, %p41_p13  ;;  %s1454_s11 = int_to_ptr.vmem [resolvable:$true] %s238_s11 }
  0x2a   : > { %s1456_s13 = scalar_lea.sflag [#allocation4], %s227_s20  ;;  %s1217_s16 = scalar_lea.hbm %s1448_s9, 2048 }
  0x2b   : > { %p1218_p5 = scmp.ne.s32.totalorder %s1448_s9, %s1217_s16  ;;  %p1219_p7 = pneg %p1450_p11 }
  0x2c   : > { %s1222_s22 = scalar_lea.hbm %s1728_s0, 4096  ;;  %p1223_p10 = scmp.lt.s32.totalorder %s1448_s9, %s1728_s0 }
  0x2d   : > { %p1220_p2 = pnand %p1219_p7, %p1218_p5  ;;  %p1224_p12 = scmp.lt.s32.totalorder %s1222_s22, %s1217_s16 }
  0x2f   : > { %p1221_p9 = pneg %p1220_p2  ;;  %p1225_p13 = por %p1224_p12, %p1223_p10 }
  0x31   : > { %p1226_p0 = pnand %p1225_p13, %p1221_p9 }
  0x33   : > { %1229 = shalt.err (!%p1226_p0)
}
  0x34   : > { %s1230_s20 = scalar_lea.vmem %s1454_s11, 2048  ;;  %s1318_s8 = smov [#allocation3]  }
  0x35   : > { %p1231_p1 = scmp.ne.s32.totalorder %s1454_s11, %s1230_s20  ;;  %s1235_s14 = sshll.u32 %s1318_s8, 4  ;;  %s1236_s14 = int_to_ptr.vmem [resolvable:$false] %s1235_s14 }
  0x36   : > { %s1237_s17 = scalar_lea.vmem %s1236_s14, 4096  ;;  %p1238_p2 = scmp.lt.s32.totalorder %s1454_s11, %s1236_s14 }
  0x37   : > { %p1233_p6 = pnand %p1231_p1, %p1219_p7  ;;  %p1239_p3 = scmp.lt.s32.totalorder %s1237_s17, %s1230_s20 }
  0x39   : > { %p1234_p5 = pneg %p1233_p6  ;;  %p1240_p4 = por %p1239_p3, %p1238_p2 }
  0x3b   : > { %p1241_p8 = pnand %p1240_p4, %p1234_p5 }
  0x3d   : > { %1244 = shalt.err (!%p1241_p8)
}
  0x3e   : > { %s1747_s16 = smov 128   ;;  %p1748_p1 = scmp.ne.s32.totalorder %s1742_s30, 0 }
  0x3f   : > { %1112 = dma.hbm_to_vmem [thread:$0]  (!%p1450_p11), %s1448_s9, 2048, %s1454_s11, %s1456_s13, %s1747_s16, %s1747_s16, %s1317_s15  }
  0x40   : > { %250 = sbr.rel (%p1748_p1) target bundleno = 417 (0x1a1), region = 40  ;;  %s1483_s21 = sand.u32 (!%p1748_p1), 1, %s1305_s24  }
  0x41   : > { %s963_s14 = sshll.u32 (!%p1748_p1), %s1483_s21, 7  ;;  %s253_s22 = scalar_lea.sflag (!%p1748_p1), [#allocation4], %s1483_s21 }
  0x42   : > { %s1489_s12 = scalar_lea.vmem (!%p1748_p1), [#allocation3], %s963_s14  ;;  %p1749_p4 = scmp.ne.s32.totalorder (!%p1748_p1), %s1740_s28, 0 }
  0x45   : > { %1288 = dma.done.wait (%p1749_p4), %s253_s22, 2048  }
  0x46   : > { %1290 = vsyncadd (%p1749_p4), %s253_s22, 4294965248  ;;  %p1750_p6 = scmp.eq.s32.totalorder %s1382_s2, 0 }
  0x48   : > { %1292 = dma.done.wait (%p1750_p6), [#allocation7], 2048   ;;  %p1751_p8 = pmov %p1750_p6 }
  0x49   : > { %v310_v0 = vld [vmem:[%s1489_s12 + $0x40] sm:$0xff]  ;;  %v1509_v5 = vld [vmem:[%s1489_s12 + $0x48] sm:$0xff]  ;;  %v1519_v9 = vld [vmem:[%s1489_s12 + $0x50] sm:$0xff]  ;;  %v389_v55 = vlaneseq  ;;  %vm455_vm0 = vcmask 1041409   ;;  %vm457_vm1 = vcmask 1042434   ;;  %vm459_vm2 = vcmask 1043459  }
  0x4a   : > { %1294 = vsyncadd (%p1751_p8), [#allocation7], 4294965248  ;;  %v1503_v1 = vld [vmem:[%s1729_s1] ss:$0 sm:$0xff]  ;;  %v1512_v6 = vld [vmem:[%s1489_s12 + $0x8] sm:$0xff]  ;;  %1053 = vmatprep.mubr.f32.mxu1 %v310_v0  ;;  %vm461_vm3 = vcmask 1044484  }
  0x4b   : > { %v302_v2 = vld [vmem:[%s1489_s12] sm:$0xff]  ;;  %v333_v3 = vmul.f32 %v1503_v1, %v310_v0  ;;  %v334_v7 = vmul.f32 %v1503_v1, %v1509_v5  ;;  %v326_v8 = vmul.f32 %v1503_v1, %v1512_v6  ;;  %v1522_v10 = vld [vmem:[%s1489_s12 + $0x10] sm:$0xff]  ;;  %v511_v11 = vld [vmem:[#allocation6 + $0x78] sm:$0xff]  ;;  %v335_v13 = vmul.f32 %v1503_v1, %v1519_v9  ;;  %s966_s11 = sshll.u32 %s1382_s2, 1  ;;  %s1609_s13 = sld [smem:[#allocation2]] }
  0x4c   : > { %v325_v4 = vmul.f32 %v1503_v1, %v302_v2  ;;  %1041 = vmatprep.mubr.f32.mxu0 %v302_v2  ;;  %1009 = vmatprep.subr.mxu0 %v511_v11  ;;  %v510_v12 = vld [vmem:[#allocation6 + $0x70] sm:$0xff]  ;;  %v327_v14 = vmul.f32 %v1503_v1, %v1522_v10  ;;  %v1529_v15 = vld [vmem:[%s1489_s12 + $0x58] sm:$0xff]  ;;  %v509_v17 = vld [vmem:[#allocation6 + $0x68] sm:$0xff]  ;;  %v390_v58 = vand.u32 127, %v389_v55  ;;  %v1592_v59 = vshrl.u32 %v389_v55, 7  ;;  %p297_p3 = scmp.lt.s32.totalorder %s966_s11, 3 }
  0x4d   : > { %357 = vadd.xlane.f32.xlu1 %v333_v3  ;;  %1065 = vmatprep.subr.mxu1 %v511_v11  ;;  %v1532_v16 = vld [vmem:[%s1489_s12 + $0x18] sm:$0xff]  ;;  %v336_v18 = vmul.f32 %v1503_v1, %v1529_v15  ;;  %v508_v20 = vld [vmem:[#allocation6 + $0x60] sm:$0xff]  ;;  %v1549_v26 = vld [vmem:[%s1489_s12 + $0x68] sm:$0xff]  ;;  %vm463_vm4 = vcmask 1045509   ;;  %vm465_vm5 = vcmask 1046534   ;;  %vm467_vm6 = vcmask 1047559  }
  0x4e   : > { %341 = vadd.xlane.f32.xlu0 %v325_v4  ;;  %1010 = vmatpush3.msra.mxu0 %v511_v11  ;;  %v328_v19 = vmul.f32 %v1503_v1, %v1532_v16  ;;  %v1539_v21 = vld [vmem:[%s1489_s12 + $0x60] sm:$0xff]  ;;  %v507_v23 = vld [vmem:[#allocation6 + $0x58] sm:$0xff]  ;;  %v1552_v27 = vld [vmem:[%s1489_s12 + $0x28] sm:$0xff]  ;;  %v338_v29 = vmul.f32 %v1503_v1, %v1549_v26  ;;  %v393_v62 = vsub.s32 %v390_v58, %v1592_v59  ;;  %vm478_vm7 = vcmask 64512   ;;  %s1760_s11 = smov (!%p297_p3, %s966_s11), 3  ;;  %s1646_s17 = scalar_lea.vmem [#allocation8], %s963_s14 }
  0x4f   : > { %1081 = vmatpush3.msra.mxu1 %v511_v11  ;;  %1011 = vmatprep.subr.mxu0 %v510_v12  ;;  %v1542_v22 = vld [vmem:[%s1489_s12 + $0x20] sm:$0xff]  ;;  %v337_v24 = vmul.f32 %v1503_v1, %v1539_v21  ;;  %v506_v28 = vld [vmem:[#allocation6 + $0x50] sm:$0xff]  ;;  %v330_v30 = vmul.f32 %v1503_v1, %v1552_v27  ;;  %v505_v31 = vld [vmem:[#allocation6 + $0x48] sm:$0xff]  ;;  %s967_s27 = sshll.u32 %s1760_s11, 3  ;;  %vm493_vm8 = vcmask 7168   ;;  %s976_s16 = sshll.u32 %s1382_s2, 11 }
  0x50   : > { %1066 = vmatprep.subr.mxu1 %v510_v12  ;;  %1012 = vmatpush3.msra.mxu0 %v510_v12  ;;  %v329_v25 = vmul.f32 %v1503_v1, %v1542_v22  ;;  %v1559_v32 = vld [vmem:[%s1489_s12 + $0x70] sm:$0xff]  ;;  %v504_v34 = vld [vmem:[#allocation6 + $0x40] sm:$0xff]  ;;  %v1569_v37 = vld [vmem:[%s1489_s12 + $0x78] sm:$0xff]  ;;  %s300_s8 = scalar_lea.vmem %s1734_s6, %s967_s27  ;;  %s843_s14 = sshll.u32 %s1646_s17, 4  ;;  %s1675_s14 = int_to_ptr.vmem [resolvable:$true] %s843_s14 }
  0x51   : > { %359 = vadd.xlane.f32.xlu1 %v334_v7  ;;  %1082 = vmatpush3.msra.mxu1 %v510_v12  ;;  %v1562_v33 = vld [vmem:[%s1489_s12 + $0x30] sm:$0xff]  ;;  %v339_v35 = vmul.f32 %v1503_v1, %v1559_v32  ;;  %v1572_v38 = vld [vmem:[%s1489_s12 + $0x38] sm:$0xff]  ;;  %v340_v40 = vmul.f32 %v1503_v1, %v1569_v37  ;;  %v501_v43 = vld [vmem:[#allocation6 + $0x28] sm:$0xff]  ;;  %s1673_s12 = scalar_lea.hbm %s1733_s5, %s976_s16  ;;  %s825_s30 = scalar_lea.sflag [#allocation5], %s1483_s21 }
  0x52   : > { %343 = vadd.xlane.f32.xlu0 %v326_v8  ;;  %1013 = vmatprep.subr.mxu0 %v509_v17  ;;  %v331_v36 = vmul.f32 %v1503_v1, %v1562_v33  ;;  %v503_v39 = vld [vmem:[#allocation6 + $0x38] sm:$0xff]  ;;  %v332_v41 = vmul.f32 %v1503_v1, %v1572_v38  ;;  %v502_v42 = vld [vmem:[#allocation6 + $0x30] sm:$0xff]  ;;  %v500_v44 = vld [vmem:[#allocation6 + $0x20] sm:$0xff]  ;;  %s1245_s15 = scalar_lea.vmem %s1675_s14, 2048  ;;  %p1752_p7 = scmp.ne.s32.totalorder %s1745_s19, 0 }
  0x53   : > { %1067 = vmatprep.subr.mxu1 %v509_v17  ;;  %1014 = vmatpush3.msra.mxu0 %v509_v17  ;;  %v499_v45 = vld [vmem:[#allocation6 + $0x18] sm:$0xff]  ;;  %v498_v46 = vld [vmem:[#allocation6 + $0x10] sm:$0xff]  ;;  %v497_v47 = vld [vmem:[#allocation6 + $0x8] sm:$0xff]  ;;  %p1246_p11 = scmp.ne.s32.totalorder %s1675_s14, %s1245_s15  ;;  %s1320_s28 = smov [#allocation8]  }
  0x54   : > { %1083 = vmatpush3.msra.mxu1 %v509_v17  ;;  %1015 = vmatprep.subr.mxu0 %v508_v20  ;;  %v496_v48 = vld [vmem:[#allocation6] sm:$0xff]  ;;  %s1249_s9 = sshll.u32 %s1320_s28, 4  ;;  %s1250_s9 = int_to_ptr.vmem [resolvable:$false] %s1249_s9 }
  0x55   : > { %361 = vadd.xlane.f32.xlu1 %v335_v13  ;;  %1068 = vmatprep.subr.mxu1 %v508_v20  ;;  %p1247_p9 = pnand %p1246_p11, %p1752_p7  ;;  %s1251_s11 = scalar_lea.vmem %s1250_s9, 4096 }
  0x56   : > { %345 = vadd.xlane.f32.xlu0 %v327_v14  ;;  %1016 = vmatpush3.msra.mxu0 %v508_v20  ;;  %p1252_p12 = scmp.lt.s32.totalorder %s1675_s14, %s1250_s9  ;;  %p1253_p13 = scmp.lt.s32.totalorder %s1251_s11, %s1245_s15 }
  0x57   : > { %1084 = vmatpush3.msra.mxu1 %v508_v20  ;;  %1017 = vmatprep.subr.mxu0 %v507_v23  ;;  %p1248_p10 = pneg %p1247_p9 }
  0x58   : > { %1069 = vmatprep.subr.mxu1 %v507_v23  ;;  %1018 = vmatpush3.msra.mxu0 %v507_v23  ;;  %p1254_p0 = por %p1253_p13, %p1252_p12 }
  0x59   : > { %363 = vadd.xlane.f32.xlu1 %v336_v18  ;;  %1085 = vmatpush3.msra.mxu1 %v507_v23 }
  0x5a   : > { %347 = vadd.xlane.f32.xlu0 %v328_v19  ;;  %1019 = vmatprep.subr.mxu0 %v506_v28  ;;  %p1255_p5 = pnand %p1254_p0, %p1248_p10 }
  0x5b   : > { %1070 = vmatprep.subr.mxu1 %v506_v28  ;;  %1020 = vmatpush3.msra.mxu0 %v506_v28 }
  0x5c   : > { %1086 = vmatpush3.msra.mxu1 %v506_v28  ;;  %1021 = vmatprep.subr.mxu0 %v505_v31 }
  0x5d   : > { %365 = vadd.xlane.f32.xlu1 %v337_v24  ;;  %1071 = vmatprep.subr.mxu1 %v505_v31 }
  0x5e   : > { %349 = vadd.xlane.f32.xlu0 %v329_v25  ;;  %1022 = vmatpush3.msra.mxu0 %v505_v31 }
  0x5f   : > { %1087 = vmatpush3.msra.mxu1 %v505_v31  ;;  %1023 = vmatprep.subr.mxu0 %v504_v34 }
  0x60   : > { %1072 = vmatprep.subr.mxu1 %v504_v34  ;;  %1024 = vmatpush3.msra.mxu0 %v504_v34 }
  0x61   : > { %367 = vadd.xlane.f32.xlu1 %v338_v29  ;;  %1088 = vmatpush3.msra.mxu1 %v504_v34 }
  0x62   : > { %351 = vadd.xlane.f32.xlu0 %v330_v30  ;;  %1025 = vmatprep.subr.mxu0 %v503_v39 }
  0x63   : > { %1073 = vmatprep.subr.mxu1 %v503_v39  ;;  %1026 = vmatpush3.msra.mxu0 %v503_v39 }
  0x64   : > { %1089 = vmatpush3.msra.mxu1 %v503_v39  ;;  %1027 = vmatprep.subr.mxu0 %v502_v42 }
  0x65   : > { %369 = vadd.xlane.f32.xlu1 %v339_v35  ;;  %1074 = vmatprep.subr.mxu1 %v502_v42 }
  0x66   : > { %353 = vadd.xlane.f32.xlu0 %v331_v36  ;;  %1028 = vmatpush3.msra.mxu0 %v502_v42 }
  0x67   : > { %1090 = vmatpush3.msra.mxu1 %v502_v42  ;;  %1029 = vmatprep.subr.mxu0 %v501_v43 }
  0x68   : > { %1075 = vmatprep.subr.mxu1 %v501_v43  ;;  %1030 = vmatpush3.msra.mxu0 %v501_v43 }
  0x69   : > { %371 = vadd.xlane.f32.xlu1 %v340_v40  ;;  %1091 = vmatpush3.msra.mxu1 %v501_v43 }
  0x6a   : > { %355 = vadd.xlane.f32.xlu0 %v332_v41  ;;  %1031 = vmatprep.subr.mxu0 %v500_v44 }
  0x6b   : > { %1076 = vmatprep.subr.mxu1 %v500_v44  ;;  %1032 = vmatpush3.msra.mxu0 %v500_v44 }
  0x6c   : > { %1092 = vmatpush3.msra.mxu1 %v500_v44  ;;  %1033 = vmatprep.subr.mxu0 %v499_v45 }
  0x6d   : > { %1077 = vmatprep.subr.mxu1 %v499_v45  ;;  %1034 = vmatpush3.msra.mxu0 %v499_v45 }
  0x6e   : > { %1093 = vmatpush3.msra.mxu1 %v499_v45  ;;  %1035 = vmatprep.subr.mxu0 %v498_v46 }
  0x6f   : > { %1078 = vmatprep.subr.mxu1 %v498_v46  ;;  %1036 = vmatpush3.msra.mxu0 %v498_v46 }
  0x70   : > { %1094 = vmatpush3.msra.mxu1 %v498_v46  ;;  %1037 = vmatprep.subr.mxu0 %v497_v47  ;;  %v969_v46 = vld [vmem:[%s1732_s4] ss:$0 sm:$0xff] }
  0x71   : > { %1079 = vmatprep.subr.mxu1 %v497_v47  ;;  %1038 = vmatpush3.msra.mxu0 %v497_v47 }
  0x72   : > { %1095 = vmatpush3.msra.mxu1 %v497_v47  ;;  %1039 = vmatprep.subr.mxu0 %v496_v48 }
  0x73   : > { %1080 = vmatprep.subr.mxu1 %v496_v48  ;;  %1040 = vmatpush3.msra.mxu0 %v496_v48 }
  0x74   : > { %1096 = vmatpush3.msra.mxu1 %v496_v48  ;;  %1042 = vmatmul.mubr.f32.vlgmr.msra.gmra.mxu0 %v1512_v6 }
  0x75   : > { %1054 = vmatmul.mubr.f32.vlgmr.msra.gmra.mxu1 %v1509_v5  ;;  %1044 = vmatprep.mubr.f32.mxu0 %v1522_v10 }
  0x76   : > { %1056 = vmatprep.mubr.f32.mxu1 %v1519_v9 }
  0x78   : > { %1045 = vmatmul.mubr.f32.gmra.mxu0 %v1532_v16 }
  0x79   : > { %1057 = vmatmul.mubr.f32.gmra.mxu1 %v1529_v15  ;;  %1047 = vmatprep.mubr.f32.mxu0 %v1542_v22 }
  0x7a   : > { %1059 = vmatprep.mubr.f32.mxu1 %v1539_v21 }
  0x7c   : > { %1048 = vmatmul.mubr.f32.gmra.mxu0 %v1552_v27 }
  0x7d   : > { %1060 = vmatmul.mubr.f32.gmra.mxu1 %v1549_v26  ;;  %1050 = vmatprep.mubr.f32.mxu0 %v1562_v33 }
  0x7e   : > { %1062 = vmatprep.mubr.f32.mxu1 %v1559_v32 }
  0x80   : > { %1051 = vmatmul.mubr.f32.gmra.mxu0 %v1572_v38 }
  0x81   : > { %1063 = vmatmul.mubr.f32.gmra.mxu1 %v1569_v37 }
  0xd6   : > { %v358_v49 = vpop.xlane.xlu1 %357 }
  0xd7   : > { %v342_v50 = vpop.xlane.xlu0 %341  ;;  %v426_v5 = vrot.slane %v358_v49, %v393_v62 }
  0xd8   : > { %v394_v6 = vrot.slane %v342_v50, %v393_v62 }
  0xda   : > { %v360_v51 = vpop.xlane.xlu1 %359 }
  0xdb   : > { %v344_v52 = vpop.xlane.xlu0 %343  ;;  %v430_v1 = vrot.slane %v360_v51, %v393_v62 }
  0xdc   : > { %v398_v2 = vrot.slane %v344_v52, %v393_v62 }
  0xdd   : > { %v469_v13 = vsel %vm455_vm0, %v430_v1, %v426_v5 }
  0xde   : > { %v362_v53 = vpop.xlane.xlu1 %361  ;;  %v456_v14 = vsel %vm455_vm0, %v398_v2, %v394_v6 }
  0xdf   : > { %v346_v54 = vpop.xlane.xlu0 %345  ;;  %v434_v3 = vrot.slane %v362_v53, %v393_v62 }
  0xe0   : > { %v402_v4 = vrot.slane %v346_v54, %v393_v62 }
  0xe1   : > { %v470_v17 = vsel %vm457_vm1, %v434_v3, %v469_v13  ;;  %v698_v13 = vsub.s32 4, %v1592_v59 }
  0xe2   : > { %v364_v56 = vpop.xlane.xlu1 %363  ;;  %v458_v18 = vsel %vm457_vm1, %v402_v4, %v456_v14 }
  0xe3   : > { %v348_v57 = vpop.xlane.xlu0 %347  ;;  %v438_v7 = vrot.slane %v364_v56, %v393_v62 }
  0xe4   : > { %v406_v8 = vrot.slane %v348_v57, %v393_v62 }
  0xe5   : > { %v471_v21 = vsel %vm459_vm2, %v438_v7, %v470_v17  ;;  %v486_v7 = vstv %s1609_s13  ;;  %v702_v17 = vsub.s32 5, %v1592_v59 }
  0xe6   : > { %v366_v60 = vpop.xlane.xlu1 %365  ;;  %v460_v22 = vsel %vm459_vm2, %v406_v8, %v458_v18  ;;  %v682_v8 = vsub.s32 0, %v1592_v59 }
  0xe7   : > { %v350_v61 = vpop.xlane.xlu0 %349  ;;  %v442_v9 = vrot.slane %v366_v60, %v393_v62 }
  0xe8   : > { %v410_v10 = vrot.slane %v350_v61, %v393_v62 }
  0xe9   : > { %v472_v23 = vsel %vm461_vm3, %v442_v9, %v471_v21  ;;  %v686_v9 = vsub.s32 1, %v1592_v59  ;;  %v706_v21 = vsub.s32 6, %v1592_v59 }
  0xea   : > { %v368_v63 = vpop.xlane.xlu1 %367  ;;  %v462_v24 = vsel %vm461_vm3, %v410_v10, %v460_v22  ;;  %v710_v22 = vsub.s32 7, %v1592_v59 }
  0xeb   : > { %v352_v0 = vpop.xlane.xlu0 %351  ;;  %v446_v15 = vrot.slane %v368_v63, %v393_v62 }
  0xec   : > { %v414_v16 = vrot.slane %v352_v0, %v393_v62 }
  0xed   : > { %v473_v27 = vsel %vm463_vm4, %v446_v15, %v472_v23 }
  0xee   : > { %v370_v11 = vpop.xlane.xlu1 %369  ;;  %v464_v28 = vsel %vm463_vm4, %v414_v16, %v462_v24 }
  0xef   : > { %v354_v12 = vpop.xlane.xlu0 %353  ;;  %v450_v19 = vrot.slane %v370_v11, %v393_v62  ;;  %v690_v11 = vsub.s32 2, %v1592_v59 }
  0xf0   : > { %v418_v20 = vrot.slane %v354_v12, %v393_v62  ;;  %v694_v12 = vsub.s32 3, %v1592_v59 }
  0xf1   : > { %v474_v31 = vsel %vm465_vm5, %v450_v19, %v473_v27 }
  0xf2   : > { %v372_v25 = vpop.xlane.xlu1 %371  ;;  %v466_v32 = vsel %vm465_vm5, %v418_v20, %v464_v28 }
  0xf3   : > { %v356_v26 = vpop.xlane.xlu0 %355  ;;  %v454_v29 = vrot.slane %v372_v25, %v393_v62  ;;  %v1319_v25 = vmov 0  }
  0xf4   : > { %v422_v30 = vrot.slane %v356_v26, %v393_v62 }
  0xf5   : > { %v475_v33 = vsel %vm467_vm6, %v454_v29, %v474_v31 }
  0xf6   : > { %v468_v34 = vsel %vm467_vm6, %v422_v30, %v466_v32  ;;  %v482_v35 = vsel %vm478_vm7, %v475_v33, 0.0 }
  0xf7   : > { %v479_v36 = vsel %vm478_vm7, %v468_v34, 0.0  ;;  %483 = vadd.xlane.f32.xlu1 %v482_v35 }
  0xf8   : > { %480 = vadd.xlane.f32.xlu0 %v479_v36 }
 0x134   : > { %v1043_v39 = vpop.f32.mrf.mxu0 }
 0x135   : > { %v1055_v37 = vpop.f32.mrf.mxu1  ;;  %v591_v48 = vadd.f32 %v1043_v39, %v969_v46 }
 0x136   : > { %v585_v41 = vpop.f32.mrf.mxu0  ;;  %v631_v50 = vadd.f32 %v1055_v37, %v969_v46 }
 0x137   : > { %v625_v38 = vpop.f32.mrf.mxu1  ;;  %v586_v51 = vadd.f32 %v969_v46, %v585_v41  ;;  %1159 = vtanh.f32 %v591_v48 }
 0x138   : > { %v1046_v43 = vpop.f32.mrf.mxu0  ;;  %v626_v53 = vadd.f32 %v969_v46, %v625_v38  ;;  %1161 = vtanh.f32 %v631_v50 }
 0x139   : > { %v1058_v40 = vpop.f32.mrf.mxu1  ;;  %1163 = vtanh.f32 %v586_v51  ;;  %v601_v0 = vadd.f32 %v1046_v43, %v969_v46 }
 0x13a   : > { %v595_v45 = vpop.f32.mrf.mxu0  ;;  %v641_v54 = vadd.f32 %v1058_v40, %v969_v46  ;;  %1165 = vtanh.f32 %v626_v53 }
 0x13b   : > { %v635_v42 = vpop.f32.mrf.mxu1  ;;  %v596_v1 = vadd.f32 %v969_v46, %v595_v45 }
 0x13c   : > { %v1049_v49 = vpop.f32.mrf.mxu0  ;;  %v636_v56 = vadd.f32 %v969_v46, %v635_v42  ;;  %1167 = vtanh.f32 %v641_v54 }
 0x13d   : > { %v1061_v44 = vpop.f32.mrf.mxu1  ;;  %v611_v2 = vadd.f32 %v1049_v49, %v969_v46 }
 0x13e   : > { %v605_v55 = vpop.f32.mrf.mxu0  ;;  %v651_v57 = vadd.f32 %v1061_v44, %v969_v46  ;;  %1169 = vtanh.f32 %v636_v56 }
 0x13f   : > { %v645_v47 = vpop.f32.mrf.mxu1  ;;  %v606_v4 = vadd.f32 %v969_v46, %v605_v55 }
 0x140   : > { %v646_v60 = vadd.f32 %v969_v46, %v645_v47  ;;  %v1052_v61 = vpop.f32.mrf.mxu0  ;;  %1171 = vtanh.f32 %v651_v57 }
 0x141   : > { %v1064_v52 = vpop.f32.mrf.mxu1  ;;  %v621_v5 = vadd.f32 %v1052_v61, %v969_v46 }
 0x142   : > { %v661_v62 = vadd.f32 %v1064_v52, %v969_v46  ;;  %1173 = vtanh.f32 %v646_v60  ;;  %v615_v3 = vpop.f32.mrf.mxu0 }
 0x143   : > { %v655_v58 = vpop.f32.mrf.mxu1  ;;  %v616_v6 = vadd.f32 %v969_v46, %v615_v3 }
 0x144   : > { %v656_v63 = vadd.f32 %v969_v46, %v655_v58  ;;  %1175 = vtanh.f32 %v661_v62  ;;  %v1617_v10 = vpop.eup %1159 }
 0x145   : > { %v1162_v16 = vpop.eup %1161 }
 0x146   : > { %1177 = vtanh.f32 %v656_v63  ;;  %v1623_v20 = vpop.eup %1163 }
 0x147   : > { %1179 = vtanh.f32 %v601_v0  ;;  %v1166_v23 = vpop.eup %1165 }
 0x148   : > { %1181 = vtanh.f32 %v596_v1 }
 0x149   : > { %1183 = vtanh.f32 %v611_v2  ;;  %v1168_v24 = vpop.eup %1167 }
 0x14a   : > { %1185 = vtanh.f32 %v606_v4 }
 0x14b   : > { %1187 = vtanh.f32 %v621_v5  ;;  %v1170_v28 = vpop.eup %1169 }
 0x14c   : > { %1189 = vtanh.f32 %v616_v6 }
 0x14d   : > { %v1172_v33 = vpop.eup %1171 }
 0x14f   : > { %v1174_v38 = vpop.eup %1173 }
 0x151   : > { %v1176_v39 = vpop.eup %1175 }
 0x153   : > { %v1178_v40 = vpop.eup %1177 }
 0x154   : > { %v1180_v45 = vpop.eup %1179 }
 0x155   : > { %v1182_v50 = vpop.eup %1181 }
 0x156   : > { %v1184_v55 = vpop.eup %1183 }
 0x157   : > { %v1186_v61 = vpop.eup %1185 }
 0x158   : > { %v1188_v62 = vpop.eup %1187 }
 0x159   : > { %v1190_v59 = vpop.eup %1189 }
 0x180   : > { %v484_v14 = vpop.xlane.xlu1 %483 }
 0x181   : > { %v481_v15 = vpop.xlane.xlu0 %480  ;;  %v488_v18 = vadd.f32 %v486_v7, %v484_v14 }
 0x182   : > { %v487_v19 = vadd.f32 %v486_v7, %v481_v15 }
 0x183   : > { %vm490_vm9 = vcmp.gt.f32.partialorder %v488_v18, 0.0 }
 0x184   : > { %vm489_vm10 = vcmp.gt.f32.partialorder %v487_v19, 0.0  ;;  %v492_v26 = vsel %vm490_vm9, 1, %v1319_v25 }
 0x185   : > { %v491_v27 = vsel %vm489_vm10, 1, %v1319_v25  ;;  %v715_v29 = vrot.slane %v492_v26, %v682_v8  ;;  %v719_v30 = vrot.slane %v492_v26, %v686_v9  ;;  %v723_v31 = vrot.slane %v492_v26, %v690_v11  ;;  %495 = vst.msk [vmem:[%s300_s8 + $0x8] sm:$0xff] %vm493_vm8, %v492_v26 }
 0x186   : > { %v727_v32 = vrot.slane %v492_v26, %v694_v12  ;;  %494 = vst.msk [vmem:[%s300_s8] sm:$0xff] %vm493_vm8, %v491_v27  ;;  %v731_v34 = vrot.slane %v492_v26, %v698_v13  ;;  %v735_v35 = vrot.slane %v492_v26, %v702_v17  ;;  %v739_v36 = vrot.slane %v492_v26, %v706_v21 }
 0x187   : > { %v743_v37 = vrot.slane %v492_v26, %v710_v22  ;;  %vm752_vm11 = vcmp.ne.s32.totalorder %v715_v29, 0  ;;  %vm753_vm12 = vcmp.ne.s32.totalorder %v719_v30, 0  ;;  %vm754_vm13 = vcmp.ne.s32.totalorder %v723_v31, 0 }
 0x188   : > { %vm755_vm14 = vcmp.ne.s32.totalorder %v727_v32, 0  ;;  %vm756_vm15 = vcmp.ne.s32.totalorder %v731_v34, 0  ;;  %vm757_vm0 = vcmp.ne.s32.totalorder %v735_v35, 0  ;;  %vm758_vm1 = vcmp.ne.s32.totalorder %v739_v36, 0 }
 0x189   : > { %vm759_vm2 = vcmp.ne.s32.totalorder %v743_v37, 0  ;;  %v800_v41 = vsel %vm752_vm11, %v1166_v23, 0.0  ;;  %v801_v42 = vsel %vm753_vm12, %v1162_v16, 0.0  ;;  %v802_v43 = vsel %vm754_vm13, %v1170_v28, 0.0 }
 0x18a   : > { %v803_v44 = vsel %vm755_vm14, %v1168_v24, 0.0  ;;  %v804_v46 = vsel %vm756_vm15, %v1174_v38, 0.0  ;;  %v805_v47 = vsel %vm757_vm0, %v1172_v33, 0.0  ;;  %v806_v48 = vsel %vm758_vm1, %v1178_v40, 0.0  ;;  %816 = vst [vmem:[%s1646_s17 + $0x40] sm:$0xff] %v800_v41  ;;  %817 = vst [vmem:[%s1646_s17 + $0x48] sm:$0xff] %v801_v42 }
 0x18b   : > { %v807_v49 = vsel %vm759_vm2, %v1176_v39, 0.0  ;;  %818 = vst [vmem:[%s1646_s17 + $0x50] sm:$0xff] %v802_v43  ;;  %819 = vst [vmem:[%s1646_s17 + $0x58] sm:$0xff] %v803_v44  ;;  %v683_v51 = vrot.slane %v491_v27, %v682_v8  ;;  %v687_v52 = vrot.slane %v491_v27, %v686_v9  ;;  %v691_v53 = vrot.slane %v491_v27, %v690_v11 }
 0x18c   : > { %820 = vst [vmem:[%s1646_s17 + $0x60] sm:$0xff] %v804_v46  ;;  %821 = vst [vmem:[%s1646_s17 + $0x68] sm:$0xff] %v805_v47  ;;  %v695_v54 = vrot.slane %v491_v27, %v694_v12  ;;  %v699_v56 = vrot.slane %v491_v27, %v698_v13  ;;  %v703_v57 = vrot.slane %v491_v27, %v702_v17 }
 0x18d   : > { %822 = vst [vmem:[%s1646_s17 + $0x70] sm:$0xff] %v806_v48  ;;  %823 = vst [vmem:[%s1646_s17 + $0x78] sm:$0xff] %v807_v49  ;;  %v707_v58 = vrot.slane %v491_v27, %v706_v21  ;;  %v711_v60 = vrot.slane %v491_v27, %v710_v22  ;;  %vm744_vm3 = vcmp.ne.s32.totalorder %v683_v51, 0  ;;  %vm745_vm4 = vcmp.ne.s32.totalorder %v687_v52, 0 }
 0x18e   : > { %vm746_vm5 = vcmp.ne.s32.totalorder %v691_v53, 0  ;;  %vm747_vm6 = vcmp.ne.s32.totalorder %v695_v54, 0  ;;  %vm748_vm7 = vcmp.ne.s32.totalorder %v699_v56, 0  ;;  %vm749_vm8 = vcmp.ne.s32.totalorder %v703_v57, 0 }
 0x18f   : > { %vm750_vm9 = vcmp.ne.s32.totalorder %v707_v58, 0  ;;  %vm751_vm10 = vcmp.ne.s32.totalorder %v711_v60, 0  ;;  %v792_v63 = vsel %vm744_vm3, %v1623_v20, 0.0  ;;  %v793_v0 = vsel %vm745_vm4, %v1617_v10, 0.0 }
 0x190   : > { %v794_v1 = vsel %vm746_vm5, %v1182_v50, 0.0  ;;  %v795_v2 = vsel %vm747_vm6, %v1180_v45, 0.0  ;;  %v796_v3 = vsel %vm748_vm7, %v1186_v61, 0.0  ;;  %v797_v4 = vsel %vm749_vm8, %v1184_v55, 0.0  ;;  %808 = vst [vmem:[%s1646_s17] sm:$0xff] %v792_v63  ;;  %809 = vst [vmem:[%s1646_s17 + $0x8] sm:$0xff] %v793_v0 }
 0x191   : > { %v798_v5 = vsel %vm750_vm9, %v1190_v59, 0.0  ;;  %v799_v6 = vsel %vm751_vm10, %v1188_v62, 0.0  ;;  %810 = vst [vmem:[%s1646_s17 + $0x10] sm:$0xff] %v794_v1  ;;  %811 = vst [vmem:[%s1646_s17 + $0x18] sm:$0xff] %v795_v2 }
 0x192   : > { %812 = vst [vmem:[%s1646_s17 + $0x20] sm:$0xff] %v796_v3  ;;  %813 = vst [vmem:[%s1646_s17 + $0x28] sm:$0xff] %v797_v4 }
 0x193   : > { %814 = vst [vmem:[%s1646_s17 + $0x30] sm:$0xff] %v798_v5  ;;  %815 = vst [vmem:[%s1646_s17 + $0x38] sm:$0xff] %v799_v6 }
 0x194   : > { %1258 = shalt.err (!%p1255_p5)
}
 0x195   : > { %s1259_s13 = scalar_lea.hbm %s1673_s12, 2048  ;;  %s1263_s20 = scalar_lea.hbm %s1733_s5, 4096 }
 0x196   : > { %p1260_p2 = scmp.ne.s32.totalorder %s1673_s12, %s1259_s13  ;;  %p1264_p6 = scmp.lt.s32.totalorder %s1673_s12, %s1733_s5 }
 0x197   : > { %p1265_p8 = scmp.lt.s32.totalorder %s1263_s20, %s1259_s13 }
 0x198   : > { %p1261_p1 = pnand %p1260_p2, %p1752_p7 }
 0x199   : > { %p1266_p3 = por %p1265_p8, %p1264_p6 }
 0x19a   : > { %p1262_p4 = pneg %p1261_p1 }
 0x19c   : > { %p1267_p11 = pnand %p1266_p3, %p1262_p4 }
 0x19e   : > { %1270 = shalt.err (!%p1267_p11)
}
 0x19f   : > { %s1321_s16 = smov 128   ;;  %s1322_s2 = smov 8  }
 0x1a0   : > { %1103 = dma.vmem_to_hbm [thread:$0]  (%p1752_p7), %s1675_s14, 2048, %s1673_s12, %s825_s30, %s1321_s16, %s1321_s16, %s1322_s2  }
 0x1a1 PF: > { %s862_s22 = sand.u32 1, %s1301_s23   ;;  %p1753_p9 = scmp.ne.s32.totalorder %s1741_s29, 0 }
 0x1a2   : > { %p1754_p10 = scmp.ge.s32.totalorder %s1313_s26, 2  ;;  %s863_s15 = scalar_lea.sflag [#allocation5], %s862_s22 }
 0x1a4   : > { %p1114_p12 = pnand %p1754_p10, %p1753_p9 }
 0x1a6   : > { %p1115_p13 = pneg %p1114_p12 }
 0x1a8   : > { %1296 = dma.done.wait (%p1115_p13), %s863_s15, 2048  }
 0x1a9   : > { %1298 = vsyncadd (%p1115_p13), %s863_s15, 4294965248  ;;  %p22_p0 = scmp.ge.s32.totalorder %s1415_s10, 4   ;;  %s1755_s23 = smov %s1305_s24 }
 0x1aa   : > { %s1756_s24 = smov %s1309_s25  ;;  %s1757_s25 = smov %s1435_s18 }
 0x1ab   : > { %s1758_s26 = smov %s1415_s10  ;;  %24 = sbr.rel (!%p22_p0) target bundleno = 8 (0x8), region = 101 }
 0x1b0   :  { %876 = vsyncpa [#allocation4], 1 }
 0x1b1   :  { %878 = vsyncpa [#allocation4 + $0x1], 1 }
 0x1b2   :  { %879 = vsyncpa [#allocation7], 1 }
 0x1b3   :  { %880 = vsyncpa [#allocation5], 1 }
 0x1b4   :  { %882 = vsyncpa [#allocation5 + $0x1], 1 }

</bundles_post_ra>
